<compile_context>
chip_gen: v7x
topology: tpu7x:2x2x1
jax: 0.10.0
libtpu: 0.0.40
codegen_flags: <defaults>
</compile_context>

<pallas_src>
import functools

import jax
import jax.numpy as jnp
from jax import lax
from jax.experimental import pallas as pl
from jax.experimental.pallas import tpu as pltpu

LANES = 128
SUBLANES = 8
CHUNK_ROWS = 256                       # inner-loop chunk (256x128 f32 = 128 KiB)
TARGET_STEP_BYTES = 8 * 1024 * 1024    # ~8 MiB of input (both operands) per grid step
SMOOTH = 1e-05


def _round_up(n, m):
    return ((n + m - 1) // m) * m


def _accumulate_block(pred_ref, gt_ref, inter_ref, union_ref, *,
                      tile_rows, total_rows, block_idx, masked):
    """Reduce this block into the per-core (8,128) output accumulators."""

    def reduce_chunk(p, g, row0):
        p = p.astype(jnp.float32)
        g = g.astype(jnp.float32)
        if masked:
            # (chunk, 1) row ids vs scalar bound; broadcast over lanes in where.
            rid = lax.broadcasted_iota(jnp.int32, (p.shape[0], 1), 0) + row0
            keep = rid < total_rows
            p = jnp.where(keep, p, 0.0)
            g = jnp.where(keep, g, 0.0)
        groups = p.shape[0] // SUBLANES
        di = (p * g).reshape(groups, SUBLANES, LANES).sum(axis=0)
        du = (p + g).reshape(groups, SUBLANES, LANES).sum(axis=0)
        return di, du

    base_row = block_idx * tile_rows
    n_full = tile_rows // CHUNK_ROWS
    rem_rows = tile_rows - n_full * CHUNK_ROWS   # multiple of 8 (tile_rows is)

    inter_acc = jnp.zeros((SUBLANES, LANES), jnp.float32)
    union_acc = jnp.zeros((SUBLANES, LANES), jnp.float32)

    if n_full > 0:
        def body(ci, carry):
            ia, ua = carry
            r0 = pl.multiple_of(ci * CHUNK_ROWS, CHUNK_ROWS)
            p = pred_ref[pl.ds(r0, CHUNK_ROWS), :]
            g = gt_ref[pl.ds(r0, CHUNK_ROWS), :]
            di, du = reduce_chunk(p, g, base_row + r0)
            return ia + di, ua + du

        inter_acc, union_acc = lax.fori_loop(
            0, n_full, body, (inter_acc, union_acc),
            unroll=True if n_full <= 4 else 4)

    if rem_rows > 0:
        r0 = n_full * CHUNK_ROWS
        p = pred_ref[pl.ds(r0, rem_rows), :]
        g = gt_ref[pl.ds(r0, rem_rows), :]
        di, du = reduce_chunk(p, g, base_row + r0)
        inter_acc = inter_acc + di
        union_acc = union_acc + du

    inter_ref[...] += inter_acc
    union_ref[...] += union_acc


def _mask_loss_kernel(pred_ref, gt_ref, inter_ref, union_ref, *,
                      tile_rows, total_rows, steps_per_core, n_blocks,
                      needs_mask):
    c = pl.program_id(0)      # core slice (parallel)
    i = pl.program_id(1)      # step within this core (arbitrary / reduction)

    @pl.when(i == 0)
    def _init():
        inter_ref[...] = jnp.zeros_like(inter_ref)
        union_ref[...] = jnp.zeros_like(union_ref)

    # Global (unclamped) block index; used for row masking.  The DMA'd data
    # for a clamped duplicate block (b >= n_blocks) is fully masked to zero.
    b = c * steps_per_core + i

    if not needs_mask:
        _accumulate_block(pred_ref, gt_ref, inter_ref, union_ref,
                          tile_rows=tile_rows, total_rows=total_rows,
                          block_idx=b, masked=False)
    else:
        # Only the final (ragged and/or duplicated) block pays for the mask;
        # all other steps take the mask-free fast path.
        @pl.when(b < n_blocks - 1)
        def _full():
            _accumulate_block(pred_ref, gt_ref, inter_ref, union_ref,
                              tile_rows=tile_rows, total_rows=total_rows,
                              block_idx=b, masked=False)

        @pl.when(b >= n_blocks - 1)
        def _ragged():
            _accumulate_block(pred_ref, gt_ref, inter_ref, union_ref,
                              tile_rows=tile_rows, total_rows=total_rows,
                              block_idx=b, masked=True)


def mask_loss(prediction, ground_truth):
    p_flat = jnp.ravel(prediction)
    g_flat = jnp.ravel(ground_truth)
    assert p_flat.shape == g_flat.shape
    n = p_flat.shape[0]

    # Body = largest prefix that is a whole number of 8x128 vreg tiles.  For
    # typical NCHW mask shapes this is the entire array (pure metadata
    # reshape).  The <=1023-element remainder is reduced in plain JAX below.
    # TODO(synk): for non-multiple-of-1024 numels the prefix slice may still
    # copy; an in-kernel flat-tail mask would avoid even that.
    body = (n // (SUBLANES * LANES)) * (SUBLANES * LANES)

    inter = jnp.float32(0.0)
    union = jnp.float32(0.0)

    if body > 0:
        pred2d = p_flat[:body].reshape(-1, LANES)
        gt2d = g_flat[:body].reshape(-1, LANES)
        rows = body // LANES                       # multiple of 8

        # ~4 MiB of each input per grid step (row count scaled by dtype width)
        # keeps per-step pipeline overhead to a few % of the DMA window on all
        # generations while double-buffered inputs stay ~16 MiB of VMEM.
        bytes_per_row = LANES * (pred2d.dtype.itemsize + gt2d.dtype.itemsize)
        max_tile_rows = max(
            CHUNK_ROWS,
            (TARGET_STEP_BYTES // bytes_per_row) // CHUNK_ROWS * CHUNK_ROWS)

        if rows > max_tile_rows:
            tile_rows = max_tile_rows
        elif rows >= 4096:
            # Big single-block input: split in two so both v7x TensorCores
            # (dimension_semantics "parallel" on the leading axis) get work.
            tile_rows = _round_up(pl.cdiv(rows, 2), CHUNK_ROWS)
        else:
            tile_rows = rows

        n_blocks = pl.cdiv(rows, tile_rows)
        num_cores = 2 if n_blocks >= 2 else 1
        steps_per_core = pl.cdiv(n_blocks, num_cores)
        needs_mask = (rows % tile_rows != 0) or \
                     (num_cores * steps_per_core != n_blocks)

        kernel = functools.partial(
            _mask_loss_kernel,
            tile_rows=tile_rows,
            total_rows=rows,
            steps_per_core=steps_per_core,
            n_blocks=n_blocks,
            needs_mask=needs_mask,
        )

        def in_map(c, i):
            # Clamp so the dummy trailing step of the second core (odd block
            # counts) re-reads the last valid block; its contribution is
            # masked to zero inside the kernel.
            return (jnp.minimum(c * steps_per_core + i, n_blocks - 1), 0)

        inter_parts, union_parts = pl.pallas_call(
            kernel,
            out_shape=(
                jax.ShapeDtypeStruct((num_cores * SUBLANES, LANES), jnp.float32),
                jax.ShapeDtypeStruct((num_cores * SUBLANES, LANES), jnp.float32),
            ),
            grid_spec=pltpu.PrefetchScalarGridSpec(
                num_scalar_prefetch=0,
                grid=(num_cores, steps_per_core),
                in_specs=[
                    pl.BlockSpec((tile_rows, LANES), in_map),
                    pl.BlockSpec((tile_rows, LANES), in_map),
                ],
                out_specs=(
                    pl.BlockSpec((SUBLANES, LANES), lambda c, i: (c, 0)),
                    pl.BlockSpec((SUBLANES, LANES), lambda c, i: (c, 0)),
                ),
            ),
            compiler_params=pltpu.CompilerParams(
                dimension_semantics=("parallel", "arbitrary"),
                # ~16 MiB double-buffered inputs + chunk temps; v5e's scoped
                # default is only 16 MiB, v7x has 64 MiB physical -> 40 MiB is
                # safe headroom on every generation.
                vmem_limit_bytes=40 * 1024 * 1024,
            ),
        )(pred2d, gt2d)

        inter = inter + jnp.sum(inter_parts)
        union = union + jnp.sum(union_parts)

    if body < n:
        # <=1023-element lane/sublane tail: trivial wrapper-side residual sum.
        pt = p_flat[body:].astype(jnp.float32)
        gt_tail = g_flat[body:].astype(jnp.float32)
        inter = inter + jnp.sum(pt * gt_tail)
        union = union + jnp.sum(pt) + jnp.sum(gt_tail)

    dice = (2.0 * inter + SMOOTH) / (union + SMOOTH)
    return 1.0 - dice


def mask_loss_ref(prediction, ground_truth):
    prediction = prediction.astype(jnp.float32)
    ground_truth = ground_truth.astype(jnp.float32)
    intersection = jnp.sum(prediction * ground_truth)
    union = jnp.sum(prediction) + jnp.sum(ground_truth)
    dice = (2.0 * intersection + SMOOTH) / (union + SMOOTH)
    return 1.0 - dice


if __name__ == "__main__":
    key = jax.random.PRNGKey(0)
    keys = jax.random.split(key, 8)

    # 1) Primary small NCHW-shaped test (single full block).
    prediction = jax.random.uniform(keys[0], (2, 4, 16, 16), dtype=jnp.float32)
    ground_truth = (jax.random.uniform(keys[1], (2, 4, 16, 16)) > 0.5).astype(
        jnp.float32)
    loss = jax.block_until_ready(mask_loss(prediction, ground_truth))
    ref = mask_loss_ref(prediction, ground_truth)
    assert jnp.allclose(loss, ref, rtol=1e-4, atol=1e-6), (loss, ref)

    # 2) Odd shape: exercises the wrapper-side residual-tail path.
    p2 = jax.random.uniform(keys[2], (3, 5, 17, 13), dtype=jnp.float32)
    g2 = (jax.random.uniform(keys[3], (3, 5, 17, 13)) > 0.5).astype(jnp.float32)
    l2 = jax.block_until_ready(mask_loss(p2, g2))
    r2 = mask_loss_ref(p2, g2)
    assert jnp.allclose(l2, r2, rtol=1e-4, atol=1e-6), (l2, r2)

    # 3) Larger shape: two even blocks -> parallel 2-core split, no mask.
    p3 = jax.random.uniform(keys[4], (2, 16, 128, 128), dtype=jnp.float32)
    g3 = (jax.random.uniform(keys[5], (2, 16, 128, 128)) > 0.5).astype(jnp.float32)
    l3 = jax.block_until_ready(mask_loss(p3, g3))
    r3 = mask_loss_ref(p3, g3)
    assert jnp.allclose(l3, r3, rtol=1e-4, atol=1e-6), (l3, r3)

    # 4) Ragged multi-block shape: 2-core split where the last block is
    #    partial -> exercises the pl.when-gated masked path.
    p4 = jax.random.uniform(keys[6], (3, 8, 128, 171), dtype=jnp.float32)
    g4 = (jax.random.uniform(keys[7], (3, 8, 128, 171)) > 0.5).astype(jnp.float32)
    l4 = jax.block_until_ready(mask_loss(p4, g4))
    r4 = mask_loss_ref(p4, g4)
    assert jnp.allclose(l4, r4, rtol=1e-4, atol=1e-6), (l4, r4)

    print("KERNEL_OK")
</pallas_src>

<mosaic_0001>
module attributes {stable_mosaic.version = 11 : i64} {
  func.func @_mask_loss_kernel(%arg0: i32, %arg1: i32, %arg2: memref<16x128xf32, #tpu.memory_space<vmem>>, %arg3: memref<16x128xf32, #tpu.memory_space<vmem>>, %arg4: memref<8x128xf32, #tpu.memory_space<vmem>>, %arg5: memref<8x128xf32, #tpu.memory_space<vmem>>) attributes {dimension_semantics = [#tpu.dimension_semantics<parallel>, #tpu.dimension_semantics<arbitrary>], iteration_bounds = array<i64: 1, 1>, scalar_prefetch = 0 : i64, scratch_operands = 0 : i64, tpu.core_type = #tpu.core_type<tc>, window_params = [{transform_indices = @transform_0, window_bounds = array<i64: 16, 128>}, {transform_indices = @transform_1, window_bounds = array<i64: 16, 128>}, {transform_indices = @transform_2, window_bounds = array<i64: 8, 128>}, {transform_indices = @transform_3, window_bounds = array<i64: 8, 128>}]} {
    %c0_i32 = arith.constant 0 : i32
    %0 = arith.cmpi eq, %arg1, %c0_i32 : i32
    %1 = arith.extui %0 : i1 to i32
    %c0_i32_0 = arith.constant 0 : i32
    %2 = arith.cmpi ne, %1, %c0_i32_0 : i32
    scf.if %2 {
      %cst_15 = arith.constant 0.000000e+00 : f32
      %21 = vector.broadcast %cst_15 : f32 to vector<8x128xf32>
      %c0_16 = arith.constant 0 : index
      %c0_17 = arith.constant 0 : index
      %22 = vector.load %arg4[%c0_16, %c0_17] : memref<8x128xf32, #tpu.memory_space<vmem>>, vector<8x128xf32>
      tpu.vector_store %arg4[%c0_16, %c0_17], %21 {strides = array<i32>} : memref<8x128xf32, #tpu.memory_space<vmem>>, vector<8x128xf32>,
      %cst_18 = arith.constant 0.000000e+00 : f32
      %23 = vector.broadcast %cst_18 : f32 to vector<8x128xf32>
      %c0_19 = arith.constant 0 : index
      %c0_20 = arith.constant 0 : index
      %24 = vector.load %arg5[%c0_19, %c0_20] : memref<8x128xf32, #tpu.memory_space<vmem>>, vector<8x128xf32>
      tpu.vector_store %arg5[%c0_19, %c0_20], %23 {strides = array<i32>} : memref<8x128xf32, #tpu.memory_space<vmem>>, vector<8x128xf32>,
    } else {
    }
    %cst = arith.constant 0.000000e+00 : f32
    %3 = vector.broadcast %cst : f32 to vector<8x128xf32>
    %cst_1 = arith.constant 0.000000e+00 : f32
    %4 = vector.broadcast %cst_1 : f32 to vector<8x128xf32>
    %c0 = arith.constant 0 : index
    %c0_2 = arith.constant 0 : index
    %5 = vector.load %arg2[%c0, %c0_2] : memref<16x128xf32, #tpu.memory_space<vmem>>, vector<16x128xf32>
    %c0_3 = arith.constant 0 : index
    %c0_4 = arith.constant 0 : index
    %6 = vector.load %arg3[%c0_3, %c0_4] : memref<16x128xf32, #tpu.memory_space<vmem>>, vector<16x128xf32>
    %7 = arith.mulf %5, %6 : vector<16x128xf32>
    %8 = vector.shape_cast %7 : vector<16x128xf32> to vector<2x8x128xf32>
    %cst_5 = arith.constant dense<0.000000e+00> : vector<8x128xf32>
    %9 = vector.multi_reduction <add>, %8, %cst_5 [0] : vector<2x8x128xf32> to vector<8x128xf32>
    %10 = arith.addf %5, %6 : vector<16x128xf32>
    %11 = vector.shape_cast %10 : vector<16x128xf32> to vector<2x8x128xf32>
    %cst_6 = arith.constant dense<0.000000e+00> : vector<8x128xf32>
    %12 = vector.multi_reduction <add>, %11, %cst_6 [0] : vector<2x8x128xf32> to vector<8x128xf32>
    %13 = arith.addf %3, %9 : vector<8x128xf32>
    %14 = arith.addf %4, %12 : vector<8x128xf32>
    %c0_7 = arith.constant 0 : index
    %c0_8 = arith.constant 0 : index
    %15 = vector.load %arg4[%c0_7, %c0_8] : memref<8x128xf32, #tpu.memory_space<vmem>>, vector<8x128xf32>
    %16 = arith.addf %15, %13 : vector<8x128xf32>
    %c0_9 = arith.constant 0 : index
    %c0_10 = arith.constant 0 : index
    %17 = vector.load %arg4[%c0_9, %c0_10] : memref<8x128xf32, #tpu.memory_space<vmem>>, vector<8x128xf32>
    tpu.vector_store %arg4[%c0_9, %c0_10], %16 {strides = array<i32>} : memref<8x128xf32, #tpu.memory_space<vmem>>, vector<8x128xf32>,
    %c0_11 = arith.constant 0 : index
    %c0_12 = arith.constant 0 : index
    %18 = vector.load %arg5[%c0_11, %c0_12] : memref<8x128xf32, #tpu.memory_space<vmem>>, vector<8x128xf32>
    %19 = arith.addf %18, %14 : vector<8x128xf32>
    %c0_13 = arith.constant 0 : index
    %c0_14 = arith.constant 0 : index
    %20 = vector.load %arg5[%c0_13, %c0_14] : memref<8x128xf32, #tpu.memory_space<vmem>>, vector<8x128xf32>
    tpu.vector_store %arg5[%c0_13, %c0_14], %19 {strides = array<i32>} : memref<8x128xf32, #tpu.memory_space<vmem>>, vector<8x128xf32>,
    return
  }
  func.func @transform_0(%arg0: i32, %arg1: i32) -> (i32, i32) {
    %c1_i32 = arith.constant 1 : i32
    %0 = arith.muli %arg0, %c1_i32 : i32
    %1 = arith.addi %0, %arg1 : i32
    %c0_i32 = arith.constant 0 : i32
    %2 = arith.minsi %1, %c0_i32 : i32
    %c0_i32_0 = arith.constant 0 : i32
    %c0_i32_1 = arith.constant 0 : i32
    return %2, %c0_i32_0 : i32, i32
  }
  func.func @transform_1(%arg0: i32, %arg1: i32) -> (i32, i32) {
    %c1_i32 = arith.constant 1 : i32
    %0 = arith.muli %arg0, %c1_i32 : i32
    %1 = arith.addi %0, %arg1 : i32
    %c0_i32 = arith.constant 0 : i32
    %2 = arith.minsi %1, %c0_i32 : i32
    %c0_i32_0 = arith.constant 0 : i32
    %c0_i32_1 = arith.constant 0 : i32
    return %2, %c0_i32_0 : i32, i32
  }
  func.func @transform_2(%arg0: i32, %arg1: i32) -> (i32, i32) {
    %c0_i32 = arith.constant 0 : i32
    %c0_i32_0 = arith.constant 0 : i32
    return %arg0, %c0_i32 : i32, i32
  }
  func.func @transform_3(%arg0: i32, %arg1: i32) -> (i32, i32) {
    %c0_i32 = arith.constant 0 : i32
    %c0_i32_0 = arith.constant 0 : i32
    return %arg0, %c0_i32 : i32, i32
  }
}

</mosaic_0001>

<bundles_post_ra>
// kernel: tpu_custom_call.1
= control target key start
LH: loop header
LB: loop body
LE: loop exit
PB: predicated region body
PF: predicated region fallthrough
CT: control target
= control target key end

     0   :  { %9 = vsyncpa [#allocation3], 0  ;;  %s298_s0 = inlined_call_operand.hbm [shape: f32[16,128], index: 0, kind: input, shape index: {}]   ;;  %s299_s1 = inlined_call_operand.hbm [shape: f32[16,128], index: 1, kind: input, shape index: {}]   ;;  %s300_s2 = inlined_call_operand.hbm [shape: f32[8,128], index: 2, kind: output, shape index: {0}]   ;;  %s301_s3 = inlined_call_operand.hbm [shape: f32[8,128], index: 3, kind: output, shape index: {1}]  }
   0x1   :  { %10 = vsyncpa [#allocation6], 0 }
   0x2   :  { %11 = vsyncpa [#allocation4], 0 }
   0x3   :  { %12 = vsyncpa [#allocation9], 0  ;;  %s224_s12 = smov [#allocation2]   ;;  %s128_s16 = scalar_lea.hbm %s298_s0, 256 }
   0x4   :  { %s24_s13 = sshll.u32 %s224_s12, 4  ;;  %p129_p0 = scmp.ne.s32.totalorder %s298_s0, %s128_s16  ;;  %s25_s13 = int_to_ptr.vmem [resolvable:$true] %s24_s13 }
   0x5   :  { %p132_p1 = scmp.lt.u32.totalorder %s128_s16, %s298_s0 }
   0x7   :  { %p134_p2 = pnand %p132_p1, %p129_p0 }
   0x9   :  { %137 = shalt.err (!%p134_p2)
}
   0xa   :  { %s138_s21 = scalar_lea.vmem %s25_s13, 256  ;;  %p143_p4 = scmp.lt.s32.totalorder %s25_s13, %s25_s13 }
   0xb   :  { %p139_p3 = scmp.ne.s32.totalorder %s25_s13, %s138_s21  ;;  %p144_p5 = scmp.lt.s32.totalorder %s138_s21, %s138_s21 }
   0xd   :  { %p145_p6 = por %p144_p5, %p143_p4 }
   0xf   :  { %p146_p7 = pnand %p145_p6, %p139_p3 }
  0x11   :  { %149 = shalt.err (!%p146_p7)
}
  0x12   :  { %s225_s22 = smov 128   ;;  %s226_s23 = smov 8  }
  0x13   :  { %30 = dma.hbm_to_vmem [thread:$0]  %s298_s0, 256, %s25_s13, [#allocation3], %s225_s22, %s225_s22, %s226_s23  }
  0x14   :  { %s227_s26 = smov [#allocation5]   ;;  %s150_s30 = scalar_lea.hbm %s299_s1, 256 }
  0x15   :  { %s42_s27 = sshll.u32 %s227_s26, 4  ;;  %p151_p8 = scmp.ne.s32.totalorder %s299_s1, %s150_s30  ;;  %s43_s27 = int_to_ptr.vmem [resolvable:$true] %s42_s27 }
  0x16   :  { %p154_p9 = scmp.lt.u32.totalorder %s150_s30, %s299_s1 }
  0x18   :  { %p156_p10 = pnand %p154_p9, %p151_p8 }
  0x1a   :  { %159 = shalt.err (!%p156_p10)
}
  0x1b   :  { %s160_s8 = scalar_lea.vmem %s43_s27, 256  ;;  %p165_p12 = scmp.lt.s32.totalorder %s43_s27, %s43_s27 }
  0x1c   :  { %p161_p11 = scmp.ne.s32.totalorder %s43_s27, %s160_s8  ;;  %p166_p13 = scmp.lt.s32.totalorder %s160_s8, %s160_s8 }
  0x1e   :  { %p167_p0 = por %p166_p13, %p165_p12 }
  0x20   :  { %p168_p1 = pnand %p167_p0, %p161_p11 }
  0x22   :  { %171 = shalt.err (!%p168_p1)
}
  0x23   :  { %48 = dma.hbm_to_vmem [thread:$0]  %s299_s1, 256, %s43_s27, [#allocation6], %s225_s22, %s225_s22, %s226_s23  }
  0x24   :  { %216 = dma.done.wait [#allocation3], 256  }
  0x25   :  { %217 = vsyncadd [#allocation3], 4294967040 }
  0x26   :  { %218 = dma.done.wait [#allocation6], 256  }
  0x27   :  { %219 = vsyncadd [#allocation6], 4294967040  ;;  %v69_v0 = vld [vmem:[#allocation2] sm:$0xff]  ;;  %v70_v1 = vld [vmem:[#allocation2 + $0x8] sm:$0xff]  ;;  %s228_s10 = smov [#allocation7]   ;;  %s229_s12 = smov [#allocation8]  }
  0x28   :  { %v71_v2 = vld [vmem:[#allocation5] sm:$0xff]  ;;  %v72_v3 = vld [vmem:[#allocation5 + $0x8] sm:$0xff]  ;;  %s93_s11 = sshll.u32 %s228_s10, 4  ;;  %s103_s13 = sshll.u32 %s229_s12, 4  ;;  %s94_s11 = int_to_ptr.vmem [resolvable:$true] %s93_s11  ;;  %s104_s13 = int_to_ptr.vmem [resolvable:$true] %s103_s13 }
  0x29   :  { %v73_v4 = vmul.f32 %v71_v2, %v69_v0  ;;  %v76_v5 = vadd.f32 %v71_v2, %v69_v0  ;;  %v74_v6 = vmul.f32 %v72_v3, %v70_v1  ;;  %v77_v7 = vadd.f32 %v72_v3, %v70_v1  ;;  %s172_s1 = scalar_lea.vmem %s94_s11, 128  ;;  %p177_p3 = scmp.lt.s32.totalorder %s94_s11, %s94_s11 }
  0x2a   :  { %p173_p2 = scmp.ne.s32.totalorder %s94_s11, %s172_s1  ;;  %p178_p4 = scmp.lt.s32.totalorder %s172_s1, %s172_s1 }
  0x2b   :  { %v75_v8 = vadd.f32 %v74_v6, %v73_v4  ;;  %v78_v9 = vadd.f32 %v77_v7, %v76_v5 }
  0x2c   :  { %p179_p5 = por %p178_p4, %p177_p3 }
  0x2d   :  { %83 = vst [vmem:[#allocation7] sm:$0xff] %v75_v8  ;;  %86 = vst [vmem:[#allocation8] sm:$0xff] %v78_v9 }
  0x2e   :  { %p180_p6 = pnand %p179_p5, %p173_p2 }
  0x30   :  { %183 = shalt.err (!%p180_p6)
}
  0x31   :  { %s184_s16 = scalar_lea.hbm %s300_s2, 128 }
  0x32   :  { %p185_p7 = scmp.ne.s32.totalorder %s300_s2, %s184_s16  ;;  %p188_p8 = scmp.lt.u32.totalorder %s184_s16, %s300_s2 }
  0x34   :  { %p190_p9 = pnand %p188_p8, %p185_p7 }
  0x36   :  { %193 = shalt.err (!%p190_p9)
}
  0x37   :  { %96 = dma.vmem_to_hbm [thread:$0]  %s94_s11, 128, %s300_s2, [#allocation4]  }
  0x38   :  { %s194_s23 = scalar_lea.vmem %s104_s13, 128  ;;  %p199_p11 = scmp.lt.s32.totalorder %s104_s13, %s104_s13 }
  0x39   :  { %p195_p10 = scmp.ne.s32.totalorder %s104_s13, %s194_s23  ;;  %p200_p12 = scmp.lt.s32.totalorder %s194_s23, %s194_s23 }
  0x3b   :  { %p201_p13 = por %p200_p12, %p199_p11 }
  0x3d   :  { %p202_p0 = pnand %p201_p13, %p195_p10 }
  0x3f   :  { %205 = shalt.err (!%p202_p0)
}
  0x40   :  { %s206_s26 = scalar_lea.hbm %s301_s3, 128 }
  0x41   :  { %p207_p1 = scmp.ne.s32.totalorder %s301_s3, %s206_s26  ;;  %p210_p2 = scmp.lt.u32.totalorder %s206_s26, %s301_s3 }
  0x43   :  { %p212_p3 = pnand %p210_p2, %p207_p1 }
  0x45   :  { %215 = shalt.err (!%p212_p3)
}
  0x46   :  { %106 = dma.vmem_to_hbm [thread:$0]  %s104_s13, 128, %s301_s3, [#allocation9]  }
  0x47   :  { %220 = dma.done.wait [#allocation4], 128  }
  0x48   :  { %221 = vsyncadd [#allocation4], 4294967168 }
  0x49   :  { %222 = dma.done.wait [#allocation9], 128  }
  0x4a   :  { %223 = vsyncadd [#allocation9], 4294967168 }
  0x4b   :  { %113 = vsyncpa [#allocation3], 1 }
  0x4c   :  { %114 = vsyncpa [#allocation6], 1 }
  0x4d   :  { %115 = vsyncpa [#allocation4], 1 }
  0x4e   :  { %116 = vsyncpa [#allocation9], 1 }

</bundles_post_ra>
